<compile_context>
chip_gen: v7x
topology: tpu7x:2x2x1
jax: 0.10.0
libtpu: 0.0.40
codegen_flags: <defaults>
</compile_context>

<pallas_src>
import math
import jax
import jax.numpy as jnp
from jax.experimental import pallas as pl
from jax.experimental.pallas import tpu as pltpu

_HIDDEN = (10, 100, 1000)
_LANE = 128
_SUBLANE = 8


def _round_up(x, m):
    return ((x + m - 1) // m) * m


def mlp_kernel(x_ref, w1_ref, b1_ref, w2_ref, b2_ref,
               w3_ref, b3_ref, w4_ref, b4_ref, o_ref):
    """One batch tile: (Linear -> ReLU) x3 -> Linear.  Dropout(p=0) == identity.

    Matmul inputs are in the weights' dtype (f32 or bf16); accumulation
    (preferred_element_type), bias add and ReLU are always f32.
    """
    cdt = w1_ref.dtype
    h = x_ref[...].astype(cdt)
    h = jnp.dot(h, w1_ref[...], preferred_element_type=jnp.float32)
    h = jnp.maximum(h + b1_ref[...], 0.0)
    h = jnp.dot(h.astype(cdt), w2_ref[...], preferred_element_type=jnp.float32)
    h = jnp.maximum(h + b2_ref[...], 0.0)
    h = jnp.dot(h.astype(cdt), w3_ref[...], preferred_element_type=jnp.float32)
    h = jnp.maximum(h + b3_ref[...], 0.0)
    h = jnp.dot(h.astype(cdt), w4_ref[...], preferred_element_type=jnp.float32)
    o_ref[...] = (h + b4_ref[...]).astype(o_ref.dtype)


def init_fc_params(key, input_size, output_size, dtype=jnp.float32):
    """Kaiming-normal weights (fan_in, gain=sqrt(2)), zero biases — matches init_weights."""
    dims = [input_size, *_HIDDEN, output_size]
    params = []
    for i in range(4):
        fan_in, fan_out = dims[i], dims[i + 1]
        key, sub = jax.random.split(key)
        std = math.sqrt(2.0 / fan_in)
        w = jax.random.normal(sub, (fan_in, fan_out), dtype=dtype) * std
        b = jnp.zeros((fan_out,), dtype=dtype)
        params.append((w, b))
    return params


def pad_fc_params(params, compute_dtype=jnp.float32):
    """Pad weights/biases to lane multiples ONCE (not on every forward call).

    Weights are stored in `compute_dtype` (bf16 recommended on v6e/v7x: native MXU
    path and half the HBM/VMEM traffic); biases stay f32 for the f32 bias/ReLU path.
    Returns (padded_arrays, logical_dims, padded_dims).
    """
    dims = [params[0][0].shape[0]] + [w.shape[1] for w, _ in params]
    dims_p = [_round_up(d, _LANE) for d in dims]
    padded = []
    for i, (w, b) in enumerate(params):
        wp = jnp.zeros((dims_p[i], dims_p[i + 1]), compute_dtype)
        wp = wp.at[:dims[i], :dims[i + 1]].set(w.astype(compute_dtype))
        bp = jnp.zeros((1, dims_p[i + 1]), jnp.float32)
        bp = bp.at[0, :dims[i + 1]].set(b.astype(jnp.float32))
        padded.extend([wp, bp])
    return tuple(padded), tuple(dims), tuple(dims_p)


def fc_forward_pallas(x, padded_params, dims, dims_p, batch_tile=None):
    """x: (batch, input_size) float32. Returns (batch, output_size) float32."""
    B = x.shape[0]
    assert x.shape[1] == dims[0], "input feature size mismatch"
    out_size = dims[-1]

    # Batch tile: >=256 keeps the 256-wide MXU (v6e/v7x) fed, <=512 keeps the live
    # set + double buffers well inside v7x's 64 MiB VMEM.  On v5e/v6e a larger tile
    # (1024-2048) amortizes the ~0.35us/step overhead further — pass `batch_tile`.
    if batch_tile is None:
        batch_tile = min(512, _round_up(B, _SUBLANE))
    tb = _round_up(batch_tile, _SUBLANE)
    Bp = _round_up(B, tb)
    num_tiles = Bp // tb

    # Pad input rows to the tile multiple; padded rows are zero and are sliced off.
    xp = jnp.zeros((Bp, dims_p[0]), jnp.float32).at[:B, :dims[0]].set(
        x.astype(jnp.float32))

    x_spec = pl.BlockSpec((tb, dims_p[0]), lambda i: (i, 0))
    out_spec = pl.BlockSpec((tb, dims_p[-1]), lambda i: (i, 0))
    # Weights / biases: grid-invariant index_map -> fetched once, resident in VMEM
    # across all batch tiles (default buffering; total is only ~1.2 MiB f32 / 0.6 MiB bf16).
    const_specs = [pl.BlockSpec(a.shape, lambda i: (0, 0)) for a in padded_params]

    out = pl.pallas_call(
        mlp_kernel,
        out_shape=jax.ShapeDtypeStruct((Bp, dims_p[-1]), jnp.float32),
        grid_spec=pltpu.PrefetchScalarGridSpec(
            num_scalar_prefetch=0,
            grid=(num_tiles,),
            in_specs=[x_spec] + const_specs,
            out_specs=out_spec,
        ),
        compiler_params=pltpu.CompilerParams(
            dimension_semantics=("parallel",),
            # Actual need is a few MiB (resident weights + double-buffered batch
            # tiles + intermediates); 32 MiB leaves headroom on every generation
            # (v7x has only 64 MiB physical VMEM per TensorCore).
            vmem_limit_bytes=32 << 20,
        ),
    )(xp, *padded_params)

    return out[:B, :out_size]


def fc_forward_ref(x, params):
    h = x
    for i, (w, b) in enumerate(params):
        h = h @ w + b
        if i < 3:
            h = jnp.maximum(h, 0.0)
    return h


if __name__ == "__main__":
    key = jax.random.PRNGKey(0)
    input_size, output_size, batch = 32, 16, 8
    k_param, k_x, k_x2 = jax.random.split(key, 3)

    params = init_fc_params(k_param, input_size, output_size)
    x = jax.random.normal(k_x, (batch, input_size), dtype=jnp.float32)
    y_ref = fc_forward_ref(x, params)

    # 1) f32 compute path: exact semantics of the torch module.
    pp_f32, dims, dims_p = pad_fc_params(params, compute_dtype=jnp.float32)
    y = fc_forward_pallas(x, pp_f32, dims, dims_p)
    jax.block_until_ready(y)
    assert y.shape == (batch, output_size)
    assert jnp.allclose(y, y_ref, atol=1e-4, rtol=1e-4), "f32 mismatch vs reference"

    # 2) Gridded path: multiple batch tiles + remainder padding (40 rows, TB=16 -> grid=(3,)).
    xg = jax.random.normal(k_x2, (40, input_size), dtype=jnp.float32)
    yg = fc_forward_pallas(xg, pp_f32, dims, dims_p, batch_tile=16)
    jax.block_until_ready(yg)
    assert jnp.allclose(yg, fc_forward_ref(xg, params), atol=1e-4, rtol=1e-4), \
        "gridded f32 mismatch vs reference"

    # 3) bf16-weight compute path (recommended on v6e/v7x): bf16 MXU matmuls with
    #    f32 accumulation; compared against the f32 reference with a loose tolerance.
    pp_bf16, _, _ = pad_fc_params(params, compute_dtype=jnp.bfloat16)
    ybf = fc_forward_pallas(x, pp_bf16, dims, dims_p)
    jax.block_until_ready(ybf)
    assert ybf.shape == (batch, output_size)
    assert jnp.allclose(ybf, y_ref, atol=5e-2, rtol=5e-2), "bf16 mismatch vs reference"

    print("KERNEL_OK")
</pallas_src>

<mosaic_0001>
module attributes {stable_mosaic.version = 11 : i64} {
  func.func @mlp_kernel(%arg0: i32, %arg1: memref<8x128xf32, #tpu.memory_space<vmem>>, %arg2: memref<128x128xf32, #tpu.memory_space<vmem>>, %arg3: memref<1x128xf32, #tpu.memory_space<vmem>>, %arg4: memref<128x128xf32, #tpu.memory_space<vmem>>, %arg5: memref<1x128xf32, #tpu.memory_space<vmem>>, %arg6: memref<128x1024xf32, #tpu.memory_space<vmem>>, %arg7: memref<1x1024xf32, #tpu.memory_space<vmem>>, %arg8: memref<1024x128xf32, #tpu.memory_space<vmem>>, %arg9: memref<1x128xf32, #tpu.memory_space<vmem>>, %arg10: memref<8x128xf32, #tpu.memory_space<vmem>>) attributes {dimension_semantics = [#tpu.dimension_semantics<parallel>], iteration_bounds = array<i64: 1>, scalar_prefetch = 0 : i64, scratch_operands = 0 : i64, tpu.core_type = #tpu.core_type<tc>, window_params = [{transform_indices = @transform_0, window_bounds = array<i64: 8, 128>}, {pipeline_mode = #tpu.pipeline_mode<synchronous>, transform_indices = @transform_1, window_bounds = array<i64: 128, 128>}, {pipeline_mode = #tpu.pipeline_mode<synchronous>, transform_indices = @transform_2, window_bounds = array<i64: 1, 128>}, {pipeline_mode = #tpu.pipeline_mode<synchronous>, transform_indices = @transform_3, window_bounds = array<i64: 128, 128>}, {pipeline_mode = #tpu.pipeline_mode<synchronous>, transform_indices = @transform_4, window_bounds = array<i64: 1, 128>}, {pipeline_mode = #tpu.pipeline_mode<synchronous>, transform_indices = @transform_5, window_bounds = array<i64: 128, 1024>}, {pipeline_mode = #tpu.pipeline_mode<synchronous>, transform_indices = @transform_6, window_bounds = array<i64: 1, 1024>}, {pipeline_mode = #tpu.pipeline_mode<synchronous>, transform_indices = @transform_7, window_bounds = array<i64: 1024, 128>}, {pipeline_mode = #tpu.pipeline_mode<synchronous>, transform_indices = @transform_8, window_bounds = array<i64: 1, 128>}, {transform_indices = @transform_9, window_bounds = array<i64: 8, 128>}]} {
    %c0 = arith.constant 0 : index
    %c0_0 = arith.constant 0 : index
    %0 = vector.load %arg1[%c0, %c0_0] : memref<8x128xf32, #tpu.memory_space<vmem>>, vector<8x128xf32>
    %c0_1 = arith.constant 0 : index
    %c0_2 = arith.constant 0 : index
    %1 = vector.load %arg2[%c0_1, %c0_2] : memref<128x128xf32, #tpu.memory_space<vmem>>, vector<128x128xf32>
    %cst = arith.constant dense<0.000000e+00> : vector<8x128xf32>
    %2 = tpu.matmul %0, %1, %cst {dimension_numbers = #tpu.dot_dimension_numbers<[1], [0], [0], [1], [0, 0, 1, 1], [], []>} : vector<8x128xf32>, vector<128x128xf32>, vector<8x128xf32> -> vector<8x128xf32>
    %c0_3 = arith.constant 0 : index
    %c0_4 = arith.constant 0 : index
    %3 = vector.load %arg3[%c0_3, %c0_4] : memref<1x128xf32, #tpu.memory_space<vmem>>, vector<1x128xf32>
    %4 = vector.broadcast %3 : vector<1x128xf32> to vector<8x128xf32>
    %5 = arith.addf %2, %4 : vector<8x128xf32>
    %cst_5 = arith.constant 0.000000e+00 : f32
    %6 = vector.broadcast %cst_5 : f32 to vector<8x128xf32>
    %7 = arith.maximumf %5, %6 : vector<8x128xf32>
    %c0_6 = arith.constant 0 : index
    %c0_7 = arith.constant 0 : index
    %8 = vector.load %arg4[%c0_6, %c0_7] : memref<128x128xf32, #tpu.memory_space<vmem>>, vector<128x128xf32>
    %cst_8 = arith.constant dense<0.000000e+00> : vector<8x128xf32>
    %9 = tpu.matmul %7, %8, %cst_8 {dimension_numbers = #tpu.dot_dimension_numbers<[1], [0], [0], [1], [0, 0, 1, 1], [], []>} : vector<8x128xf32>, vector<128x128xf32>, vector<8x128xf32> -> vector<8x128xf32>
    %c0_9 = arith.constant 0 : index
    %c0_10 = arith.constant 0 : index
    %10 = vector.load %arg5[%c0_9, %c0_10] : memref<1x128xf32, #tpu.memory_space<vmem>>, vector<1x128xf32>
    %11 = vector.broadcast %10 : vector<1x128xf32> to vector<8x128xf32>
    %12 = arith.addf %9, %11 : vector<8x128xf32>
    %cst_11 = arith.constant 0.000000e+00 : f32
    %13 = vector.broadcast %cst_11 : f32 to vector<8x128xf32>
    %14 = arith.maximumf %12, %13 : vector<8x128xf32>
    %c0_12 = arith.constant 0 : index
    %c0_13 = arith.constant 0 : index
    %15 = vector.load %arg6[%c0_12, %c0_13] : memref<128x1024xf32, #tpu.memory_space<vmem>>, vector<128x1024xf32>
    %cst_14 = arith.constant dense<0.000000e+00> : vector<8x1024xf32>
    %16 = tpu.matmul %14, %15, %cst_14 {dimension_numbers = #tpu.dot_dimension_numbers<[1], [0], [0], [1], [0, 0, 1, 1], [], []>} : vector<8x128xf32>, vector<128x1024xf32>, vector<8x1024xf32> -> vector<8x1024xf32>
    %c0_15 = arith.constant 0 : index
    %c0_16 = arith.constant 0 : index
    %17 = vector.load %arg7[%c0_15, %c0_16] : memref<1x1024xf32, #tpu.memory_space<vmem>>, vector<1x1024xf32>
    %18 = vector.broadcast %17 : vector<1x1024xf32> to vector<8x1024xf32>
    %19 = arith.addf %16, %18 : vector<8x1024xf32>
    %cst_17 = arith.constant 0.000000e+00 : f32
    %20 = vector.broadcast %cst_17 : f32 to vector<8x1024xf32>
    %21 = arith.maximumf %19, %20 : vector<8x1024xf32>
    %c0_18 = arith.constant 0 : index
    %c0_19 = arith.constant 0 : index
    %22 = vector.load %arg8[%c0_18, %c0_19] : memref<1024x128xf32, #tpu.memory_space<vmem>>, vector<1024x128xf32>
    %cst_20 = arith.constant dense<0.000000e+00> : vector<8x128xf32>
    %23 = tpu.matmul %21, %22, %cst_20 {dimension_numbers = #tpu.dot_dimension_numbers<[1], [0], [0], [1], [0, 0, 1, 1], [], []>} : vector<8x1024xf32>, vector<1024x128xf32>, vector<8x128xf32> -> vector<8x128xf32>
    %c0_21 = arith.constant 0 : index
    %c0_22 = arith.constant 0 : index
    %24 = vector.load %arg9[%c0_21, %c0_22] : memref<1x128xf32, #tpu.memory_space<vmem>>, vector<1x128xf32>
    %25 = vector.broadcast %24 : vector<1x128xf32> to vector<8x128xf32>
    %26 = arith.addf %23, %25 : vector<8x128xf32>
    %c0_23 = arith.constant 0 : index
    %c0_24 = arith.constant 0 : index
    %27 = vector.load %arg10[%c0_23, %c0_24] : memref<8x128xf32, #tpu.memory_space<vmem>>, vector<8x128xf32>
    tpu.vector_store %arg10[%c0_23, %c0_24], %26 {strides = array<i32>} : memref<8x128xf32, #tpu.memory_space<vmem>>, vector<8x128xf32>,
    return
  }
  func.func @transform_0(%arg0: i32) -> (i32, i32) {
    %c0_i32 = arith.constant 0 : i32
    %c0_i32_0 = arith.constant 0 : i32
    return %arg0, %c0_i32 : i32, i32
  }
  func.func @transform_1(%arg0: i32) -> (i32, i32) {
    %c0_i32 = arith.constant 0 : i32
    %c0_i32_0 = arith.constant 0 : i32
    %c0_i32_1 = arith.constant 0 : i32
    return %c0_i32, %c0_i32_0 : i32, i32
  }
  func.func @transform_2(%arg0: i32) -> (i32, i32) {
    %c0_i32 = arith.constant 0 : i32
    %c0_i32_0 = arith.constant 0 : i32
    %c0_i32_1 = arith.constant 0 : i32
    return %c0_i32, %c0_i32_0 : i32, i32
  }
  func.func @transform_3(%arg0: i32) -> (i32, i32) {
    %c0_i32 = arith.constant 0 : i32
    %c0_i32_0 = arith.constant 0 : i32
    %c0_i32_1 = arith.constant 0 : i32
    return %c0_i32, %c0_i32_0 : i32, i32
  }
  func.func @transform_4(%arg0: i32) -> (i32, i32) {
    %c0_i32 = arith.constant 0 : i32
    %c0_i32_0 = arith.constant 0 : i32
    %c0_i32_1 = arith.constant 0 : i32
    return %c0_i32, %c0_i32_0 : i32, i32
  }
  func.func @transform_5(%arg0: i32) -> (i32, i32) {
    %c0_i32 = arith.constant 0 : i32
    %c0_i32_0 = arith.constant 0 : i32
    %c0_i32_1 = arith.constant 0 : i32
    return %c0_i32, %c0_i32_0 : i32, i32
  }
  func.func @transform_6(%arg0: i32) -> (i32, i32) {
    %c0_i32 = arith.constant 0 : i32
    %c0_i32_0 = arith.constant 0 : i32
    %c0_i32_1 = arith.constant 0 : i32
    return %c0_i32, %c0_i32_0 : i32, i32
  }
  func.func @transform_7(%arg0: i32) -> (i32, i32) {
    %c0_i32 = arith.constant 0 : i32
    %c0_i32_0 = arith.constant 0 : i32
    %c0_i32_1 = arith.constant 0 : i32
    return %c0_i32, %c0_i32_0 : i32, i32
  }
  func.func @transform_8(%arg0: i32) -> (i32, i32) {
    %c0_i32 = arith.constant 0 : i32
    %c0_i32_0 = arith.constant 0 : i32
    %c0_i32_1 = arith.constant 0 : i32
    return %c0_i32, %c0_i32_0 : i32, i32
  }
  func.func @transform_9(%arg0: i32) -> (i32, i32) {
    %c0_i32 = arith.constant 0 : i32
    %c0_i32_0 = arith.constant 0 : i32
    return %arg0, %c0_i32 : i32, i32
  }
}

</mosaic_0001>

<bundles_post_ra>
// kernel: tpu_custom_call.1
= control target key start
LH: loop header
LB: loop body
LE: loop exit
PB: predicated region body
PF: predicated region fallthrough
CT: control target
= control target key end

     0   :  { %14 = vsyncpa [#allocation3], 0  ;;  %s2098_s0 = inlined_call_operand.hbm [shape: f32[8,128], index: 0, kind: input, shape index: {}]   ;;  %s2099_s1 = inlined_call_operand.hbm [shape: f32[128,128], index: 1, kind: input, shape index: {}]   ;;  %s2100_s2 = inlined_call_operand.vmem [shape: f32[1,128], index: 2, kind: input, shape index: {}]   ;;  %s2101_s3 = inlined_call_operand.hbm [shape: f32[128,128], index: 3, kind: input, shape index: {}]   ;;  %s2102_s4 = inlined_call_operand.vmem [shape: f32[1,128], index: 4, kind: input, shape index: {}]   ;;  %s2103_s5 = inlined_call_operand.hbm [shape: f32[128,1024], index: 5, kind: input, shape index: {}]   ;;  %s2104_s6 = inlined_call_operand.vmem [shape: f32[1,1024], index: 6, kind: input, shape index: {}]   ;;  %s2105_s7 = inlined_call_operand.hbm [shape: f32[1024,128], index: 7, kind: input, shape index: {}]   ;;  %s2106_s8 = inlined_call_operand.vmem [shape: f32[1,128], index: 8, kind: input, shape index: {}]   ;;  %s2107_s9 = inlined_call_operand.hbm [shape: f32[8,128], index: 9, kind: output, shape index: {}]  }
   0x1   :  { %15 = vsyncpa [#allocation6], 0 }
   0x2   :  { %16 = vsyncpa [#allocation9], 0 }
   0x3   :  { %17 = vsyncpa [#allocation4], 0  ;;  %s1887_s30 = smov [#allocation5]   ;;  %s1747_s13 = scalar_lea.hbm %s2099_s1, 2048 }
   0x4   :  { %s33_s10 = sshll.u32 %s1887_s30, 4  ;;  %p1748_p0 = scmp.ne.s32.totalorder %s2099_s1, %s1747_s13  ;;  %s34_s10 = int_to_ptr.vmem [resolvable:$true] %s33_s10 }
   0x5   :  { %p1751_p1 = scmp.lt.u32.totalorder %s1747_s13, %s2099_s1 }
   0x7   :  { %p1753_p2 = pnand %p1751_p1, %p1748_p0 }
   0x9   :  { %1756 = shalt.err (!%p1753_p2)
}
   0xa   :  { %s1757_s18 = scalar_lea.vmem %s34_s10, 2048  ;;  %p1762_p4 = scmp.lt.s32.totalorder %s34_s10, %s34_s10 }
   0xb   :  { %p1758_p3 = scmp.ne.s32.totalorder %s34_s10, %s1757_s18  ;;  %p1763_p5 = scmp.lt.s32.totalorder %s1757_s18, %s1757_s18 }
   0xd   :  { %p1764_p6 = por %p1763_p5, %p1762_p4 }
   0xf   :  { %p1765_p7 = pnand %p1764_p6, %p1758_p3 }
  0x11   :  { %1768 = shalt.err (!%p1765_p7)
}
  0x12   :  { %s1888_s19 = smov 128   ;;  %s1889_s20 = smov 8  }
  0x13   :  { %39 = dma.hbm_to_vmem [thread:$0]  %s2099_s1, 2048, %s34_s10, [#allocation6], %s1888_s19, %s1888_s19, %s1889_s20  }
  0x14   :  { %s1890_s23 = smov [#allocation8]   ;;  %s1769_s27 = scalar_lea.hbm %s2103_s5, 16384 }
  0x15   :  { %s61_s24 = sshll.u32 %s1890_s23, 4  ;;  %p1770_p8 = scmp.ne.s32.totalorder %s2103_s5, %s1769_s27  ;;  %s62_s24 = int_to_ptr.vmem [resolvable:$true] %s61_s24 }
  0x16   :  { %p1773_p9 = scmp.lt.u32.totalorder %s1769_s27, %s2103_s5 }
  0x18   :  { %p1775_p10 = pnand %p1773_p9, %p1770_p8 }
  0x1a   :  { %1778 = shalt.err (!%p1775_p10)
}
  0x1b   :  { %s1779_s12 = scalar_lea.vmem %s62_s24, 16384  ;;  %p1784_p12 = scmp.lt.s32.totalorder %s62_s24, %s62_s24 }
  0x1c   :  { %p1780_p11 = scmp.ne.s32.totalorder %s62_s24, %s1779_s12  ;;  %p1785_p13 = scmp.lt.s32.totalorder %s1779_s12, %s1779_s12 }
  0x1e   :  { %p1786_p0 = por %p1785_p13, %p1784_p12 }
  0x20   :  { %p1787_p1 = pnand %p1786_p0, %p1780_p11 }
  0x22   :  { %1790 = shalt.err (!%p1787_p1)
}
  0x23   :  { %s1891_s1 = smov 1024   ;;  %s1892_s10 = smov 64  }
  0x24   :  { %67 = dma.hbm_to_vmem [thread:$0]  %s2103_s5, 16384, %s62_s24, [#allocation9], %s1891_s1, %s1891_s1, %s1892_s10  }
  0x25   :  { %s1893_s15 = smov [#allocation2]   ;;  %s1894_s17 = smov [#allocation7]  }
  0x26   :  { %s24_s16 = sshll.u32 %s1893_s15, 4  ;;  %s47_s18 = sshll.u32 %s1894_s17, 4  ;;  %s25_s16 = int_to_ptr.vmem [resolvable:$true] %s24_s16  ;;  %s1977_s18 = int_to_ptr.vmem [resolvable:$true] %s47_s18 }
  0x27   :  { %s1791_s23 = scalar_lea.hbm %s2098_s0, 128 }
  0x28   :  { %p1792_p2 = scmp.ne.s32.totalorder %s2098_s0, %s1791_s23  ;;  %p1795_p3 = scmp.lt.u32.totalorder %s1791_s23, %s2098_s0 }
  0x2a   :  { %p1797_p4 = pnand %p1795_p3, %p1792_p2 }
  0x2c   :  { %1800 = shalt.err (!%p1797_p4)
}
  0x2d   :  { %s1801_s5 = scalar_lea.vmem %s25_s16, 128  ;;  %p1806_p6 = scmp.lt.s32.totalorder %s25_s16, %s25_s16 }
  0x2e   :  { %p1802_p5 = scmp.ne.s32.totalorder %s25_s16, %s1801_s5  ;;  %p1807_p7 = scmp.lt.s32.totalorder %s1801_s5, %s1801_s5 }
  0x30   :  { %p1808_p8 = por %p1807_p7, %p1806_p6 }
  0x32   :  { %p1809_p9 = pnand %p1808_p8, %p1802_p5 }
  0x34   :  { %1812 = shalt.err (!%p1809_p9)
}
  0x35   :  { %27 = dma.hbm_to_vmem [thread:$0]  %s2098_s0, 128, %s25_s16, [#allocation3]  }
  0x36   :  { %s1813_s12 = scalar_lea.hbm %s2101_s3, 2048 }
  0x37   :  { %p1814_p10 = scmp.ne.s32.totalorder %s2101_s3, %s1813_s12  ;;  %p1817_p11 = scmp.lt.u32.totalorder %s1813_s12, %s2101_s3 }
  0x39   :  { %p1819_p12 = pnand %p1817_p11, %p1814_p10 }
  0x3b   :  { %1822 = shalt.err (!%p1819_p12)
}
  0x3c   :  { %s1823_s15 = scalar_lea.vmem %s1977_s18, 2048  ;;  %p1828_p0 = scmp.lt.s32.totalorder %s1977_s18, %s1977_s18 }
  0x3d   :  { %p1824_p13 = scmp.ne.s32.totalorder %s1977_s18, %s1823_s15  ;;  %p1829_p1 = scmp.lt.s32.totalorder %s1823_s15, %s1823_s15 }
  0x3f   :  { %p1830_p2 = por %p1829_p1, %p1828_p0 }
  0x41   :  { %p1831_p3 = pnand %p1830_p2, %p1824_p13 }
  0x43   :  { %1834 = shalt.err (!%p1831_p3)
}
  0x44   :  { %53 = dma.hbm_to_vmem [thread:$0]  %s2101_s3, 2048, %s1977_s18, [#allocation6], %s1888_s19, %s1888_s19, %s1889_s20  }
  0x45   :  { %s1895_s17 = smov [#allocation10]   ;;  %s1835_s25 = scalar_lea.hbm %s2105_s7, 16384 }
  0x46   :  { %s75_s21 = sshll.u32 %s1895_s17, 4  ;;  %p1836_p4 = scmp.ne.s32.totalorder %s2105_s7, %s1835_s25  ;;  %s76_s21 = int_to_ptr.vmem [resolvable:$true] %s75_s21 }
  0x47   :  { %p1839_p5 = scmp.lt.u32.totalorder %s1835_s25, %s2105_s7 }
  0x49   :  { %p1841_p6 = pnand %p1839_p5, %p1836_p4 }
  0x4b   :  { %1844 = shalt.err (!%p1841_p6)
}
  0x4c   :  { %s1845_s24 = scalar_lea.vmem %s76_s21, 16384  ;;  %p1850_p8 = scmp.lt.s32.totalorder %s76_s21, %s76_s21 }
  0x4d   :  { %p1846_p7 = scmp.ne.s32.totalorder %s76_s21, %s1845_s24  ;;  %p1851_p9 = scmp.lt.s32.totalorder %s1845_s24, %s1845_s24 }
  0x4f   :  { %p1852_p10 = por %p1851_p9, %p1850_p8 }
  0x51   :  { %p1853_p11 = pnand %p1852_p10, %p1846_p7 }
  0x53   :  { %1856 = shalt.err (!%p1853_p11)
}
  0x54   :  { %81 = dma.hbm_to_vmem [thread:$0]  %s2105_s7, 16384, %s76_s21, [#allocation9], %s1888_s19, %s1888_s19, %s1889_s20  }
  0x55   :  { %1879 = dma.done.wait [#allocation3], 128  }
  0x56   :  { %1880 = vsyncadd [#allocation3], 4294967168 }
  0x57   :  { %1881 = dma.done.wait [#allocation6], 4096  }
  0x58   :  { %1882 = vsyncadd [#allocation6], 4294963200 }
  0x59   :  { %1883 = dma.done.wait [#allocation9], 32768  }
  0x5a   :  { %1884 = vsyncadd [#allocation9], 4294934528  ;;  %v1896_v0 = vmov 0.0|0.0   ;;  %vm1897_vm0 = vmmov 0   ;;  %v1898_v1 = vmov 0.0   ;;  %v100_v2 = vld [vmem:[#allocation5] sm:$0xff] }
  0x5b   :  { %1430 = vmatprep.subr.bf16.mxu0 %v1896_v0  ;;  %1392 = vmatprep.mubr.msk.f32.mxu0 %vm1897_vm0, %v1898_v1  ;;  %v101_v3 = vld [vmem:[#allocation5 + $0x8] sm:$0xff]  ;;  %v102_v4 = vld [vmem:[#allocation5 + $0x10] sm:$0xff]  ;;  %v103_v6 = vld [vmem:[#allocation5 + $0x18] sm:$0xff]  ;;  %s1899_s11 = smov [#allocation11]  }
  0x5c   :  { %1454 = vmatprep.subr.bf16.mxu1 %v1896_v0  ;;  %1427 = vmatprep.mubr.msk.f32.mxu1 %vm1897_vm0, %v1898_v1  ;;  %v1431_v5 = vpack.c.bf16 %v101_v3, %v100_v2  ;;  %v1434_v7 = vpack.c.bf16 %v103_v6, %v102_v4  ;;  %v104_v8 = vld [vmem:[#allocation5 + $0x20] sm:$0xff]  ;;  %v105_v9 = vld [vmem:[#allocation5 + $0x28] sm:$0xff]  ;;  %v196_v12 = vld [vmem:[#allocation7 + $0x10] sm:$0xff]  ;;  %s1172_s12 = sshll.u32 %s1899_s11, 4  ;;  %s1173_s12 = int_to_ptr.vmem [resolvable:$true] %s1172_s12 }
  0x5d   :  { %v194_v10 = vld [vmem:[#allocation7] sm:$0xff]  ;;  %v195_v11 = vld [vmem:[#allocation7 + $0x8] sm:$0xff]  ;;  %v197_v13 = vld [vmem:[#allocation7 + $0x18] sm:$0xff]  ;;  %v1437_v14 = vpack.c.bf16 %v105_v9, %v104_v8  ;;  %s1857_s1 = scalar_lea.vmem %s1173_s12, 128  ;;  %p1862_p13 = scmp.lt.s32.totalorder %s1173_s12, %s1173_s12 }
  0x5e   :  { %1432 = vmatpush3.bf16.msra.mxu0 %v1431_v5  ;;  %v1455_v15 = vpack.c.bf16 %v195_v11, %v194_v10  ;;  %v106_v16 = vld [vmem:[#allocation5 + $0x30] sm:$0xff]  ;;  %v107_v17 = vld [vmem:[#allocation5 + $0x38] sm:$0xff]  ;;  %v1458_v18 = vpack.c.bf16 %v197_v13, %v196_v12  ;;  %v198_v19 = vld [vmem:[#allocation7 + $0x20] sm:$0xff]  ;;  %p1858_p12 = scmp.ne.s32.totalorder %s1173_s12, %s1857_s1  ;;  %p1863_p0 = scmp.lt.s32.totalorder %s1857_s1, %s1857_s1 }
  0x5f   :  { %1433 = vmatprep.subr.bf16.mxu0 %v1896_v0  ;;  %v199_v20 = vld [vmem:[#allocation7 + $0x28] sm:$0xff]  ;;  %v1440_v21 = vpack.c.bf16 %v107_v17, %v106_v16  ;;  %v108_v22 = vld [vmem:[#allocation5 + $0x40] sm:$0xff]  ;;  %v200_v25 = vld [vmem:[#allocation7 + $0x30] sm:$0xff] }
  0x60   :  { %1456 = vmatpush3.bf16.msra.mxu1 %v1455_v15  ;;  %v109_v23 = vld [vmem:[#allocation5 + $0x48] sm:$0xff]  ;;  %v1461_v24 = vpack.c.bf16 %v199_v20, %v198_v19  ;;  %v201_v26 = vld [vmem:[#allocation7 + $0x38] sm:$0xff]  ;;  %v110_v28 = vld [vmem:[#allocation5 + $0x50] sm:$0xff]  ;;  %p1864_p1 = por %p1863_p0, %p1862_p13 }
  0x61   :  { %1457 = vmatprep.subr.bf16.mxu1 %v1896_v0  ;;  %v1443_v27 = vpack.c.bf16 %v109_v23, %v108_v22  ;;  %v111_v29 = vld [vmem:[#allocation5 + $0x58] sm:$0xff]  ;;  %v1464_v30 = vpack.c.bf16 %v201_v26, %v200_v25  ;;  %v202_v31 = vld [vmem:[#allocation7 + $0x40] sm:$0xff]  ;;  %v203_v32 = vld [vmem:[#allocation7 + $0x48] sm:$0xff] }
  0x62   :  { %1435 = vmatpush3.bf16.msra.mxu0 %v1434_v7  ;;  %v1446_v33 = vpack.c.bf16 %v111_v29, %v110_v28  ;;  %v112_v34 = vld [vmem:[#allocation5 + $0x60] sm:$0xff]  ;;  %v113_v35 = vld [vmem:[#allocation5 + $0x68] sm:$0xff]  ;;  %v1467_v36 = vpack.c.bf16 %v203_v32, %v202_v31  ;;  %v204_v37 = vld [vmem:[#allocation7 + $0x50] sm:$0xff]  ;;  %p1865_p2 = pnand %p1864_p1, %p1858_p12 }
  0x63   :  { %1436 = vmatprep.subr.bf16.mxu0 %v1896_v0  ;;  %v205_v38 = vld [vmem:[#allocation7 + $0x58] sm:$0xff]  ;;  %v1449_v39 = vpack.c.bf16 %v113_v35, %v112_v34  ;;  %v114_v40 = vld [vmem:[#allocation5 + $0x70] sm:$0xff]  ;;  %v206_v43 = vld [vmem:[#allocation7 + $0x60] sm:$0xff] }
  0x64   :  { %1459 = vmatpush3.bf16.msra.mxu1 %v1458_v18  ;;  %v115_v41 = vld [vmem:[#allocation5 + $0x78] sm:$0xff]  ;;  %v1470_v42 = vpack.c.bf16 %v205_v38, %v204_v37  ;;  %v207_v44 = vld [vmem:[#allocation7 + $0x68] sm:$0xff]  ;;  %v208_v48 = vld [vmem:[#allocation7 + $0x70] sm:$0xff] }
  0x65   :  { %1460 = vmatprep.subr.bf16.mxu1 %v1896_v0  ;;  %v1452_v45 = vpack.c.bf16 %v115_v41, %v114_v40  ;;  %v1473_v46 = vpack.c.bf16 %v207_v44, %v206_v43  ;;  %v99_v47 = vld [vmem:[#allocation2] sm:$0xff]  ;;  %v289_v51 = vld [vmem:[#allocation8 + $0x8] sm:$0xff]  ;;  %v288_v56 = vld [vmem:[#allocation8] sm:$0xff] }
  0x66   :  { %1438 = vmatpush3.bf16.msra.mxu0 %v1437_v14  ;;  %v209_v49 = vld [vmem:[#allocation7 + $0x78] sm:$0xff]  ;;  %v297_v52 = vld [vmem:[#allocation8 + $0x48] sm:$0xff]  ;;  %v296_v57 = vld [vmem:[#allocation8 + $0x40] sm:$0xff] }
  0x67   :  { %1439 = vmatprep.subr.bf16.mxu0 %v1896_v0  ;;  %v1476_v50 = vpack.c.bf16 %v209_v49, %v208_v48  ;;  %v291_v53 = vld [vmem:[#allocation8 + $0x18] sm:$0xff]  ;;  %v1478_v54 = vpack.c.bf16 %v297_v52, %v289_v51  ;;  %v1480_v59 = vpack.c.bf16 %v296_v57, %v288_v56  ;;  %v305_v60 = vld [vmem:[#allocation8 + $0x88] sm:$0xff]  ;;  %v304_v63 = vld [vmem:[#allocation8 + $0x80] sm:$0xff] }
  0x68   :  { %1462 = vmatpush3.bf16.msra.mxu1 %v1461_v24  ;;  %v299_v55 = vld [vmem:[#allocation8 + $0x58] sm:$0xff]  ;;  %v313_v61 = vld [vmem:[#allocation8 + $0xc8] sm:$0xff]  ;;  %v320_v6 = vld [vmem:[#allocation8 + $0x100] sm:$0xff] }
  0x69   :  { %1463 = vmatprep.subr.bf16.mxu1 %v1896_v0  ;;  %v1510_v58 = vpack.c.bf16 %v299_v55, %v291_v53  ;;  %v1482_v62 = vpack.c.bf16 %v313_v61, %v305_v60  ;;  %v321_v3 = vld [vmem:[#allocation8 + $0x108] sm:$0xff]  ;;  %v328_v7 = vld [vmem:[#allocation8 + $0x140] sm:$0xff]  ;;  %v290_v34 = vld [vmem:[#allocation8 + $0x10] sm:$0xff] }
  0x6a   :  { %1441 = vmatpush3.bf16.msra.mxu0 %v1440_v21  ;;  %v329_v4 = vld [vmem:[#allocation8 + $0x148] sm:$0xff]  ;;  %v1488_v8 = vpack.c.bf16 %v328_v7, %v320_v6  ;;  %v336_v12 = vld [vmem:[#allocation8 + $0x180] sm:$0xff]  ;;  %v298_v35 = vld [vmem:[#allocation8 + $0x50] sm:$0xff] }
  0x6b   :  { %1442 = vmatprep.subr.bf16.mxu0 %v1896_v0  ;;  %v1486_v5 = vpack.c.bf16 %v329_v4, %v321_v3  ;;  %v337_v9 = vld [vmem:[#allocation8 + $0x188] sm:$0xff]  ;;  %v344_v13 = vld [vmem:[#allocation8 + $0x1c0] sm:$0xff]  ;;  %v307_v37 = vld [vmem:[#allocation8 + $0x98] sm:$0xff]  ;;  %v1512_v41 = vpack.c.bf16 %v298_v35, %v290_v34 }
  0x6c   :  { %1465 = vmatpush3.bf16.msra.mxu1 %v1464_v30  ;;  %v345_v10 = vld [vmem:[#allocation8 + $0x1c8] sm:$0xff]  ;;  %v1492_v14 = vpack.c.bf16 %v344_v13, %v336_v12  ;;  %v352_v18 = vld [vmem:[#allocation8 + $0x200] sm:$0xff]  ;;  %v315_v38 = vld [vmem:[#allocation8 + $0xd8] sm:$0xff] }
  0x6d   :  { %1466 = vmatprep.subr.bf16.mxu1 %v1896_v0  ;;  %v1490_v11 = vpack.c.bf16 %v345_v10, %v337_v9  ;;  %v353_v15 = vld [vmem:[#allocation8 + $0x208] sm:$0xff]  ;;  %v360_v19 = vld [vmem:[#allocation8 + $0x240] sm:$0xff]  ;;  %v1514_v43 = vpack.c.bf16 %v315_v38, %v307_v37  ;;  %v306_v44 = vld [vmem:[#allocation8 + $0x90] sm:$0xff] }
  0x6e   :  { %1444 = vmatpush3.bf16.msra.mxu0 %v1443_v27  ;;  %v361_v16 = vld [vmem:[#allocation8 + $0x248] sm:$0xff]  ;;  %v1496_v20 = vpack.c.bf16 %v360_v19, %v352_v18  ;;  %v368_v24 = vld [vmem:[#allocation8 + $0x280] sm:$0xff]  ;;  %v330_v51 = vld [vmem:[#allocation8 + $0x150] sm:$0xff] }
  0x6f   :  { %1445 = vmatprep.subr.bf16.mxu0 %v1896_v0  ;;  %v1494_v17 = vpack.c.bf16 %v361_v16, %v353_v15  ;;  %v369_v21 = vld [vmem:[#allocation8 + $0x288] sm:$0xff]  ;;  %v376_v25 = vld [vmem:[#allocation8 + $0x2c0] sm:$0xff]  ;;  %v339_v52 = vld [vmem:[#allocation8 + $0x198] sm:$0xff] }
  0x70   :  { %1468 = vmatpush3.bf16.msra.mxu1 %v1467_v36  ;;  %v377_v22 = vld [vmem:[#allocation8 + $0x2c8] sm:$0xff]  ;;  %v1500_v26 = vpack.c.bf16 %v376_v25, %v368_v24  ;;  %v384_v30 = vld [vmem:[#allocation8 + $0x300] sm:$0xff]  ;;  %v347_v53 = vld [vmem:[#allocation8 + $0x1d8] sm:$0xff] }
  0x71   :  { %1469 = vmatprep.subr.bf16.mxu1 %v1896_v0  ;;  %v1498_v23 = vpack.c.bf16 %v377_v22, %v369_v21  ;;  %v385_v27 = vld [vmem:[#allocation8 + $0x308] sm:$0xff]  ;;  %v392_v31 = vld [vmem:[#allocation8 + $0x340] sm:$0xff]  ;;  %v1522_v55 = vpack.c.bf16 %v347_v53, %v339_v52  ;;  %v338_v56 = vld [vmem:[#allocation8 + $0x190] sm:$0xff] }
  0x72   :  { %1447 = vmatpush3.bf16.msra.mxu0 %v1446_v33  ;;  %v393_v28 = vld [vmem:[#allocation8 + $0x348] sm:$0xff]  ;;  %v1504_v32 = vpack.c.bf16 %v392_v31, %v384_v30  ;;  %v1183_v33 = vld [vmem:[%s2100_s2] ss:$0 sm:$0xff]  ;;  %v346_v57 = vld [vmem:[#allocation8 + $0x1d0] sm:$0xff] }
  0x73   :  { %1448 = vmatprep.subr.bf16.mxu0 %v1896_v0  ;;  %v1502_v29 = vpack.c.bf16 %v393_v28, %v385_v27  ;;  %v1524_v60 = vpack.c.bf16 %v346_v57, %v338_v56  ;;  %v378_v6 = vld [vmem:[#allocation8 + $0x2d0] sm:$0xff]  ;;  %v387_v7 = vld [vmem:[#allocation8 + $0x318] sm:$0xff]  ;;  %v409_v15 = vld [vmem:[#allocation8 + $0x3c8] sm:$0xff] }
  0x74   :  { %1471 = vmatpush3.bf16.msra.mxu1 %v1470_v42  ;;  %v394_v12 = vld [vmem:[#allocation8 + $0x350] sm:$0xff]  ;;  %v403_v16 = vld [vmem:[#allocation8 + $0x398] sm:$0xff]  ;;  %v400_v19 = vld [vmem:[#allocation8 + $0x380] sm:$0xff] }
  0x75   :  { %1472 = vmatprep.subr.bf16.mxu1 %v1896_v0  ;;  %v411_v18 = vld [vmem:[#allocation8 + $0x3d8] sm:$0xff]  ;;  %v410_v24 = vld [vmem:[#allocation8 + $0x3d0] sm:$0xff]  ;;  %v301_v27 = vld [vmem:[#allocation8 + $0x68] sm:$0xff] }
  0x76   :  { %1450 = vmatpush3.bf16.msra.mxu0 %v1449_v39  ;;  %v1538_v21 = vpack.c.bf16 %v411_v18, %v403_v16  ;;  %v295_v28 = vld [vmem:[#allocation8 + $0x38] sm:$0xff]  ;;  %v300_v34 = vld [vmem:[#allocation8 + $0x60] sm:$0xff]  ;;  %v294_v35 = vld [vmem:[#allocation8 + $0x30] sm:$0xff] }
  0x77   :  { %1451 = vmatprep.subr.bf16.mxu0 %v1896_v0  ;;  %v303_v30 = vld [vmem:[#allocation8 + $0x78] sm:$0xff]  ;;  %v309_v37 = vld [vmem:[#allocation8 + $0xa8] sm:$0xff]  ;;  %v318_v52 = vld [vmem:[#allocation8 + $0xf0] sm:$0xff] }
  0x78   :  { %1474 = vmatpush3.bf16.msra.mxu1 %v1473_v46  ;;  %v323_v46 = vld [vmem:[#allocation8 + $0x118] sm:$0xff]  ;;  %v1574_v31 = vpack.c.bf16 %v303_v30, %v295_v28  ;;  %v325_v53 = vld [vmem:[#allocation8 + $0x128] sm:$0xff] }
  0x79   :  { %1475 = vmatprep.subr.bf16.mxu1 %v1896_v0  ;;  %v312_v0 = vld [vmem:[#allocation8 + $0xc0] sm:$0xff]  ;;  %v335_v56 = vld [vmem:[#allocation8 + $0x178] sm:$0xff] }
  0x7a   :  { %1453 = vmatpush3.bf16.msra.mxu0 %v1452_v45  ;;  %v1484_v2 = vpack.c.bf16 %v312_v0, %v304_v63  ;;  %v314_v45 = vld [vmem:[#allocation8 + $0xd0] sm:$0xff]  ;;  %v371_v0 = vld [vmem:[#allocation8 + $0x298] sm:$0xff] }
  0x7b   :  { %1479 = vmatprep.subr.bf16.mxu0 %v1478_v54  ;;  %v1516_v48 = vpack.c.bf16 %v314_v45, %v306_v44  ;;  %v362_v63 = vld [vmem:[#allocation8 + $0x250] sm:$0xff]  ;;  %v359_v16 = vld [vmem:[#allocation8 + $0x238] sm:$0xff] }
  0x7c   :  { %1477 = vmatpush3.bf16.msra.mxu1 %v1476_v50  ;;  %v322_v50 = vld [vmem:[#allocation8 + $0x110] sm:$0xff]  ;;  %v383_v28 = vld [vmem:[#allocation8 + $0x2f8] sm:$0xff] }
  0x7d   :  { %1393 = vmatmul.mubr.f32.vlgmr.msra.gmra.mrb[0].mxu0 %v99_v47  ;;  %1511 = vmatprep.subr.bf16.mxu1 %v1510_v58  ;;  %v331_v47 = vld [vmem:[#allocation8 + $0x158] sm:$0xff]  ;;  %v1520_v54 = vpack.c.bf16 %v330_v51, %v322_v50  ;;  %v310_v51 = vld [vmem:[#allocation8 + $0xb0] sm:$0xff] }
  0x7e   :  { %522 = vmatprep.mubr.f32.mxu0 %v1898_v1  ;;  %1481 = vmatpush1.bf16.msra.mxu0 %v1480_v59  ;;  %v1518_v49 = vpack.c.bf16 %v331_v47, %v323_v46  ;;  %v355_v58 = vld [vmem:[#allocation8 + $0x218] sm:$0xff]  ;;  %v308_v46 = vld [vmem:[#allocation8 + $0xa0] sm:$0xff] }
  0x7f   :  { %1483 = vmatprep.subr.bf16.mxu0 %v1482_v62  ;;  %v363_v59 = vld [vmem:[#allocation8 + $0x258] sm:$0xff]  ;;  %v354_v62 = vld [vmem:[#allocation8 + $0x210] sm:$0xff]  ;;  %v316_v47 = vld [vmem:[#allocation8 + $0xe0] sm:$0xff] }
  0x80   :  { %v1526_v61 = vpack.c.bf16 %v363_v59, %v355_v58  ;;  %v1528_v3 = vpack.c.bf16 %v362_v63, %v354_v62  ;;  %v1548_v57 = vpack.c.bf16 %v316_v47, %v308_v46  ;;  %v1580_v58 = vpack.c.bf16 %v318_v52, %v310_v51  ;;  %v324_v59 = vld [vmem:[#allocation8 + $0x120] sm:$0xff]  ;;  %v326_v63 = vld [vmem:[#allocation8 + $0x130] sm:$0xff]  ;;  %v413_v51 = vld [vmem:[#allocation8 + $0x3e8] sm:$0xff] }
  0x81   :  { %v390_v47 = vld [vmem:[#allocation8 + $0x330] sm:$0xff]  ;;  %v407_v52 = vld [vmem:[#allocation8 + $0x3b8] sm:$0xff] }
  0x82   :  { %1485 = vmatpush1.bf16.msra.mxu0 %v1484_v2  ;;  %v379_v2 = vld [vmem:[#allocation8 + $0x2d8] sm:$0xff] }
  0x83   :  { %1487 = vmatprep.subr.bf16.mxu0 %v1486_v5  ;;  %v1530_v4 = vpack.c.bf16 %v379_v2, %v371_v0  ;;  %v370_v5 = vld [vmem:[#allocation8 + $0x290] sm:$0xff]  ;;  %v341_v2 = vld [vmem:[#allocation8 + $0x1a8] sm:$0xff] }
  0x84   :  { %v1532_v9 = vpack.c.bf16 %v378_v6, %v370_v5  ;;  %v334_v0 = vld [vmem:[#allocation8 + $0x170] sm:$0xff]  ;;  %v351_v5 = vld [vmem:[#allocation8 + $0x1f8] sm:$0xff] }
  0x86   :  { %1489 = vmatpush1.bf16.msra.mxu0 %v1488_v8  ;;  %v395_v8 = vld [vmem:[#allocation8 + $0x358] sm:$0xff] }
  0x87   :  { %1491 = vmatprep.subr.bf16.mxu0 %v1490_v11  ;;  %v1534_v10 = vpack.c.bf16 %v395_v8, %v387_v7  ;;  %v386_v11 = vld [vmem:[#allocation8 + $0x310] sm:$0xff]  ;;  %v1584_v7 = vpack.c.bf16 %v334_v0, %v326_v63  ;;  %v340_v8 = vld [vmem:[#allocation8 + $0x1a0] sm:$0xff]  ;;  %v767_v63 = vld [vmem:[#allocation10 + $0x88] sm:$0xff] }
  0x88   :  { %v1536_v13 = vpack.c.bf16 %v394_v12, %v386_v11  ;;  %v342_v12 = vld [vmem:[#allocation8 + $0x1b0] sm:$0xff]  ;;  %v798_v0 = vld [vmem:[#allocation10 + $0x180] sm:$0xff] }
  0x8a   :  { %1493 = vmatpush1.bf16.msra.mxu0 %v1492_v14  ;;  %v401_v14 = vld [vmem:[#allocation8 + $0x388] sm:$0xff] }
  0x8b   :  { %1495 = vmatprep.subr.bf16.mxu0 %v1494_v17  ;;  %v1506_v17 = vpack.c.bf16 %v409_v15, %v401_v14  ;;  %v357_v14 = vld [vmem:[#allocation8 + $0x228] sm:$0xff] }
  0x8c   :  { %v365_v15 = vld [vmem:[#allocation8 + $0x268] sm:$0xff] }
  0x8e   :  { %1497 = vmatpush1.bf16.msra.mxu0 %v1496_v20  ;;  %v408_v20 = vld [vmem:[#allocation8 + $0x3c0] sm:$0xff] }
  0x8f   :  { %1499 = vmatprep.subr.bf16.mxu0 %v1498_v23  ;;  %v1508_v22 = vpack.c.bf16 %v408_v20, %v400_v19  ;;  %v402_v23 = vld [vmem:[#allocation8 + $0x390] sm:$0xff]  ;;  %v356_v19 = vld [vmem:[#allocation8 + $0x220] sm:$0xff] }
  0x90   :  { %v1540_v25 = vpack.c.bf16 %v410_v24, %v402_v23  ;;  %v364_v20 = vld [vmem:[#allocation8 + $0x260] sm:$0xff]  ;;  %v358_v23 = vld [vmem:[#allocation8 + $0x230] sm:$0xff] }
  0x91   :  { %v366_v24 = vld [vmem:[#allocation8 + $0x270] sm:$0xff] }
  0x92   :  { %1501 = vmatpush1.bf16.msra.mxu0 %v1500_v26  ;;  %v293_v26 = vld [vmem:[#allocation8 + $0x28] sm:$0xff]  ;;  %v1592_v30 = vpack.c.bf16 %v366_v24, %v358_v23  ;;  %v802_v24 = vld [vmem:[#allocation10 + $0x1a0] sm:$0xff] }
  0x93   :  { %1503 = vmatprep.subr.bf16.mxu0 %v1502_v29  ;;  %v1542_v29 = vpack.c.bf16 %v301_v27, %v293_v26  ;;  %v381_v26 = vld [vmem:[#allocation8 + $0x2e8] sm:$0xff]  ;;  %v375_v27 = vld [vmem:[#allocation8 + $0x2b8] sm:$0xff] }
  0x94   :  { %v771_v23 = vld [vmem:[#allocation10 + $0xa8] sm:$0xff] }
  0x96   :  { %1505 = vmatpush1.bf16.msra.mxu0 %v1504_v32  ;;  %v1184_v32 = vld [vmem:[%s2102_s4] ss:$0 sm:$0xff] }
  0x97   :  { %1507 = vmatprep.subr.bf16.mxu0 %v1506_v17  ;;  %v367_v17 = vld [vmem:[#allocation8 + $0x278] sm:$0xff] }
  0x9a   :  { %1509 = vmatpush1.bf16.msra.mxu0 %v1508_v22  ;;  %v1590_v22 = vpack.c.bf16 %v367_v17, %v359_v16  ;;  %v752_v17 = vld [vmem:[#allocation10 + $0x10] sm:$0xff] }
  0x9b   :  { %1543 = vmatprep.subr.bf16.mxu0 %v1542_v29  ;;  %v1560_v29 = vpack.c.bf16 %v364_v20, %v356_v19  ;;  %v784_v20 = vld [vmem:[#allocation10 + $0x110] sm:$0xff] }
 0x150   :  { %v189_v36 = vpop.f32.mrb[0].mxu0 }
 0x151   :  { %v190_v39 = vadd.f32 %v1183_v33, %v189_v36  ;;  %v1394_v40 = vpop.f32.mrb[1].mxu0  ;;  %v292_v33 = vld [vmem:[#allocation8 + $0x20] sm:$0xff]  ;;  %v302_v36 = vld [vmem:[#allocation8 + $0x70] sm:$0xff] }
 0x152   :  { %v311_v40 = vld [vmem:[#allocation8 + $0xb8] sm:$0xff]  ;;  %v1544_v44 = vpack.c.bf16 %v300_v34, %v292_v33  ;;  %v1576_v45 = vpack.c.bf16 %v302_v36, %v294_v35  ;;  %v1594_v34 = vpack.c.bf16 %v383_v28, %v375_v27  ;;  %v374_v35 = vld [vmem:[#allocation8 + $0x2b0] sm:$0xff]  ;;  %v754_v28 = vld [vmem:[#allocation10 + $0x20] sm:$0xff] }
 0x153   :  { %v193_v42 = vmax.f32 %v190_v39, 0.0  ;;  %v317_v39 = vld [vmem:[#allocation8 + $0xe8] sm:$0xff]  ;;  %v382_v36 = vld [vmem:[#allocation8 + $0x2f0] sm:$0xff] }
 0x155   :  { %1428 = vmatmul.mubr.f32.vlgmr.msra.gmra.mrb[0].mxu1 %v193_v42 }
 0x156   :  { %1513 = vmatpush1.bf16.msra.mxu1 %v1512_v41  ;;  %593 = vmatprep.mubr.f32.mxu1 %v1898_v1  ;;  %v319_v41 = vld [vmem:[#allocation8 + $0xf8] sm:$0xff] }
 0x157   :  { %1515 = vmatprep.subr.bf16.mxu1 %v1514_v43  ;;  %v1578_v50 = vpack.c.bf16 %v319_v41, %v311_v40  ;;  %v399_v40 = vld [vmem:[#allocation8 + $0x378] sm:$0xff] }
 0x15a   :  { %1517 = vmatpush1.bf16.msra.mxu1 %v1516_v48 }
 0x15b   :  { %1519 = vmatprep.subr.bf16.mxu1 %v1518_v49  ;;  %v1546_v49 = vpack.c.bf16 %v317_v39, %v309_v37  ;;  %v389_v37 = vld [vmem:[#allocation8 + $0x328] sm:$0xff]  ;;  %v391_v39 = vld [vmem:[#allocation8 + $0x338] sm:$0xff] }
 0x15c   :  { %v1598_v46 = vpack.c.bf16 %v399_v40, %v391_v39  ;;  %v756_v39 = vld [vmem:[#allocation10 + $0x30] sm:$0xff]  ;;  %v757_v40 = vld [vmem:[#allocation10 + $0x38] sm:$0xff] }
 0x15e   :  { %1521 = vmatpush1.bf16.msra.mxu1 %v1520_v54  ;;  %v333_v54 = vld [vmem:[#allocation8 + $0x168] sm:$0xff] }
 0x15f   :  { %1523 = vmatprep.subr.bf16.mxu1 %v1522_v55  ;;  %v327_v55 = vld [vmem:[#allocation8 + $0x138] sm:$0xff] }
 0x160   :  { %v1582_v62 = vpack.c.bf16 %v335_v56, %v327_v55  ;;  %v404_v56 = vld [vmem:[#allocation8 + $0x3a0] sm:$0xff] }
 0x162   :  { %1525 = vmatpush1.bf16.msra.mxu1 %v1524_v60  ;;  %v332_v60 = vld [vmem:[#allocation8 + $0x160] sm:$0xff] }
 0x163   :  { %1527 = vmatprep.subr.bf16.mxu1 %v1526_v61  ;;  %v1550_v61 = vpack.c.bf16 %v333_v54, %v325_v53  ;;  %v1552_v6 = vpack.c.bf16 %v332_v60, %v324_v59  ;;  %v415_v53 = vld [vmem:[#allocation8 + $0x3f8] sm:$0xff]  ;;  %v406_v60 = vld [vmem:[#allocation8 + $0x3b0] sm:$0xff] }
 0x164   :  { %v1602_v59 = vpack.c.bf16 %v415_v53, %v407_v52  ;;  %v758_v52 = vld [vmem:[#allocation10 + $0x40] sm:$0xff]  ;;  %v759_v53 = vld [vmem:[#allocation10 + $0x48] sm:$0xff] }
 0x166   :  { %1529 = vmatpush1.bf16.msra.mxu1 %v1528_v3  ;;  %v349_v3 = vld [vmem:[#allocation8 + $0x1e8] sm:$0xff] }
 0x167   :  { %1531 = vmatprep.subr.bf16.mxu1 %v1530_v4  ;;  %v343_v4 = vld [vmem:[#allocation8 + $0x1b8] sm:$0xff] }
 0x168   :  { %v1586_v11 = vpack.c.bf16 %v351_v5, %v343_v4  ;;  %v750_v5 = vld [vmem:[#allocation10] sm:$0xff] }
 0x16a   :  { %1533 = vmatpush1.bf16.msra.mxu1 %v1532_v9  ;;  %v348_v9 = vld [vmem:[#allocation8 + $0x1e0] sm:$0xff] }
 0x16b   :  { %1535 = vmatprep.subr.bf16.mxu1 %v1534_v10  ;;  %v1554_v10 = vpack.c.bf16 %v349_v3, %v341_v2  ;;  %v1556_v18 = vpack.c.bf16 %v348_v9, %v340_v8  ;;  %v799_v2 = vld [vmem:[#allocation10 + $0x188] sm:$0xff]  ;;  %v782_v9 = vld [vmem:[#allocation10 + $0x100] sm:$0xff] }
 0x16c   :  { %v1638_v8 = vpack.c.bf16 %v799_v2, %v798_v0  ;;  %v760_v0 = vld [vmem:[#allocation10 + $0x50] sm:$0xff]  ;;  %v761_v2 = vld [vmem:[#allocation10 + $0x58] sm:$0xff] }
 0x16e   :  { %1537 = vmatpush1.bf16.msra.mxu1 %v1536_v13  ;;  %v350_v13 = vld [vmem:[#allocation8 + $0x1f0] sm:$0xff] }
 0x16f   :  { %1539 = vmatprep.subr.bf16.mxu1 %v1538_v21  ;;  %v1558_v21 = vpack.c.bf16 %v365_v15, %v357_v14  ;;  %v801_v14 = vld [vmem:[#allocation10 + $0x198] sm:$0xff] }
 0x172   :  { %1541 = vmatpush1.bf16.msra.mxu1 %v1540_v25  ;;  %v373_v25 = vld [vmem:[#allocation8 + $0x2a8] sm:$0xff] }
 0x173   :  { %1575 = vmatprep.subr.bf16.mxu1 %v1574_v31  ;;  %v372_v31 = vld [vmem:[#allocation8 + $0x2a0] sm:$0xff]  ;;  %v1562_v33 = vpack.c.bf16 %v381_v26, %v373_v25  ;;  %v803_v25 = vld [vmem:[#allocation10 + $0x1a8] sm:$0xff] }
 0x228   :  { %v283_v38 = vpop.f32.mrb[0].mxu1 }
 0x229   :  { %v284_v42 = vadd.f32 %v1184_v32, %v283_v38  ;;  %v1429_v43 = vpop.f32.mrb[1].mxu1  ;;  %v380_v32 = vld [vmem:[#allocation8 + $0x2e0] sm:$0xff]  ;;  %v397_v38 = vld [vmem:[#allocation8 + $0x368] sm:$0xff] }
 0x22a   :  { %v1564_v41 = vpack.c.bf16 %v380_v32, %v372_v31  ;;  %v388_v43 = vld [vmem:[#allocation8 + $0x320] sm:$0xff]  ;;  %v1646_v31 = vpack.c.bf16 %v803_v25, %v802_v24  ;;  %v813_v24 = vld [vmem:[#allocation10 + $0x1f8] sm:$0xff]  ;;  %v764_v25 = vld [vmem:[#allocation10 + $0x70] sm:$0xff] }
 0x22b   :  { %v2052_v48 = vmax.f32 %v284_v42, 0.0  ;;  %v1596_v42 = vpack.c.bf16 %v382_v36, %v374_v35  ;;  %v786_v32 = vld [vmem:[#allocation10 + $0x120] sm:$0xff]  ;;  %v773_v35 = vld [vmem:[#allocation10 + $0xb8] sm:$0xff]  ;;  %v804_v36 = vld [vmem:[#allocation10 + $0x1b0] sm:$0xff] }
 0x22d   :  { %523 = vmatmul.mubr.f32.vlgmr.msra.gmra.mrb[2].mxu0 %v2052_v48  ;;  %594 = vmatmul.mubr.f32.vlgmr.msra.gmra.mrb[2].mxu1 %v2052_v48 }
 0x22e   :  { %1545 = vmatpush1.bf16.msra.mxu0 %v1544_v44  ;;  %1577 = vmatpush1.bf16.msra.mxu1 %v1576_v45  ;;  %v396_v44 = vld [vmem:[#allocation8 + $0x360] sm:$0xff]  ;;  %v1566_v45 = vpack.c.bf16 %v397_v38, %v389_v37  ;;  %v805_v37 = vld [vmem:[#allocation10 + $0x1b8] sm:$0xff] }
 0x22f   :  { %1547 = vmatprep.subr.bf16.mxu0 %v1546_v49  ;;  %1579 = vmatprep.subr.bf16.mxu1 %v1578_v50  ;;  %v398_v49 = vld [vmem:[#allocation8 + $0x370] sm:$0xff]  ;;  %v405_v50 = vld [vmem:[#allocation8 + $0x3a8] sm:$0xff]  ;;  %v1568_v54 = vpack.c.bf16 %v396_v44, %v388_v43  ;;  %v789_v44 = vld [vmem:[#allocation10 + $0x138] sm:$0xff] }
 0x230   :  { %664 = vmatprep.mubr.f32.mxu0 %v1898_v1  ;;  %735 = vmatprep.mubr.f32.mxu1 %v1898_v1  ;;  %v1588_v1 = vpack.c.bf16 %v350_v13, %v342_v12  ;;  %v1600_v55 = vpack.c.bf16 %v398_v49, %v390_v47  ;;  %v769_v12 = vld [vmem:[#allocation10 + $0x98] sm:$0xff]  ;;  %v800_v13 = vld [vmem:[#allocation10 + $0x190] sm:$0xff]  ;;  %v806_v47 = vld [vmem:[#allocation10 + $0x1c0] sm:$0xff] }
 0x231   :  { %v1642_v19 = vpack.c.bf16 %v801_v14, %v800_v13  ;;  %v788_v43 = vld [vmem:[#allocation10 + $0x130] sm:$0xff]  ;;  %v807_v49 = vld [vmem:[#allocation10 + $0x1c8] sm:$0xff]  ;;  %v762_v13 = vld [vmem:[#allocation10 + $0x60] sm:$0xff] }
 0x232   :  { %1549 = vmatpush1.bf16.msra.mxu0 %v1548_v57  ;;  %1581 = vmatpush1.bf16.msra.mxu1 %v1580_v58  ;;  %v412_v57 = vld [vmem:[#allocation8 + $0x3e0] sm:$0xff]  ;;  %v1570_v58 = vpack.c.bf16 %v413_v51, %v405_v50  ;;  %v1620_v50 = vpack.c.bf16 %v757_v40, %v756_v39  ;;  %v1652_v51 = vpack.c.bf16 %v789_v44, %v788_v43 }
 0x233   :  { %1551 = vmatprep.subr.bf16.mxu0 %v1550_v61  ;;  %1583 = vmatprep.subr.bf16.mxu1 %v1582_v62  ;;  %v414_v61 = vld [vmem:[#allocation8 + $0x3f0] sm:$0xff]  ;;  %v766_v62 = vld [vmem:[#allocation10 + $0x80] sm:$0xff]  ;;  %v1572_v3 = vpack.c.bf16 %v412_v57, %v404_v56  ;;  %v791_v57 = vld [vmem:[#allocation10 + $0x148] sm:$0xff] }
 0x234   :  { %v1604_v4 = vpack.c.bf16 %v414_v61, %v406_v60  ;;  %v790_v56 = vld [vmem:[#allocation10 + $0x140] sm:$0xff]  ;;  %v808_v60 = vld [vmem:[#allocation10 + $0x1d0] sm:$0xff]  ;;  %v809_v61 = vld [vmem:[#allocation10 + $0x1d8] sm:$0xff] }
 0x236   :  { %1553 = vmatpush1.bf16.msra.mxu0 %v1552_v6  ;;  %1585 = vmatpush1.bf16.msra.mxu1 %v1584_v7  ;;  %v751_v6 = vld [vmem:[#allocation10 + $0x8] sm:$0xff]  ;;  %v1606_v7 = vpack.c.bf16 %v767_v63, %v766_v62  ;;  %v1624_v62 = vpack.c.bf16 %v759_v53, %v758_v52  ;;  %v1656_v63 = vpack.c.bf16 %v791_v57, %v790_v56  ;;  %v846_v57 = vld [vmem:[#allocation10 + $0x300] sm:$0xff] }
 0x237   :  { %1555 = vmatprep.subr.bf16.mxu0 %v1554_v10  ;;  %1587 = vmatprep.subr.bf16.mxu1 %v1586_v11  ;;  %v783_v10 = vld [vmem:[#allocation10 + $0x108] sm:$0xff]  ;;  %v768_v11 = vld [vmem:[#allocation10 + $0x90] sm:$0xff]  ;;  %v1608_v15 = vpack.c.bf16 %v751_v6, %v750_v5  ;;  %v793_v6 = vld [vmem:[#allocation10 + $0x158] sm:$0xff] }
 0x238   :  { %v1640_v16 = vpack.c.bf16 %v783_v10, %v782_v9  ;;  %v792_v5 = vld [vmem:[#allocation10 + $0x150] sm:$0xff]  ;;  %v810_v9 = vld [vmem:[#allocation10 + $0x1e0] sm:$0xff]  ;;  %v811_v10 = vld [vmem:[#allocation10 + $0x1e8] sm:$0xff] }
 0x239   :  { %v815_v52 = vld [vmem:[#allocation10 + $0x208] sm:$0xff] }
 0x23a   :  { %1557 = vmatpush1.bf16.msra.mxu0 %v1556_v18  ;;  %1589 = vmatpush1.bf16.msra.mxu1 %v1588_v1  ;;  %v753_v18 = vld [vmem:[#allocation10 + $0x18] sm:$0xff]  ;;  %v1610_v1 = vpack.c.bf16 %v769_v12, %v768_v11  ;;  %v1628_v11 = vpack.c.bf16 %v761_v2, %v760_v0  ;;  %v1660_v12 = vpack.c.bf16 %v793_v6, %v792_v5  ;;  %v816_v6 = vld [vmem:[#allocation10 + $0x210] sm:$0xff] }
 0x23b   :  { %1559 = vmatprep.subr.bf16.mxu0 %v1558_v21  ;;  %1591 = vmatprep.subr.bf16.mxu1 %v1590_v22  ;;  %v785_v21 = vld [vmem:[#allocation10 + $0x118] sm:$0xff]  ;;  %v770_v22 = vld [vmem:[#allocation10 + $0xa0] sm:$0xff]  ;;  %v1612_v26 = vpack.c.bf16 %v753_v18, %v752_v17  ;;  %v795_v18 = vld [vmem:[#allocation10 + $0x168] sm:$0xff] }
 0x23c   :  { %v1644_v27 = vpack.c.bf16 %v785_v21, %v784_v20  ;;  %v794_v17 = vld [vmem:[#allocation10 + $0x160] sm:$0xff]  ;;  %v780_v20 = vld [vmem:[#allocation10 + $0xf0] sm:$0xff]  ;;  %v781_v21 = vld [vmem:[#allocation10 + $0xf8] sm:$0xff] }
 0x23d   :  { %v865_v0 = vld [vmem:[#allocation10 + $0x398] sm:$0xff] }
 0x23e   :  { %1561 = vmatpush1.bf16.msra.mxu0 %v1560_v29  ;;  %1593 = vmatpush1.bf16.msra.mxu1 %v1592_v30  ;;  %v755_v29 = vld [vmem:[#allocation10 + $0x28] sm:$0xff]  ;;  %v1614_v30 = vpack.c.bf16 %v771_v23, %v770_v22  ;;  %v812_v22 = vld [vmem:[#allocation10 + $0x1f0] sm:$0xff]  ;;  %v1634_v23 = vpack.c.bf16 %v781_v21, %v780_v20 }
 0x23f   :  { %1563 = vmatprep.subr.bf16.mxu0 %v1562_v33  ;;  %1595 = vmatprep.subr.bf16.mxu1 %v1594_v34  ;;  %v787_v33 = vld [vmem:[#allocation10 + $0x128] sm:$0xff]  ;;  %v772_v34 = vld [vmem:[#allocation10 + $0xb0] sm:$0xff]  ;;  %v1616_v38 = vpack.c.bf16 %v755_v29, %v754_v28 }
 0x240   :  { %v796_v29 = vld [vmem:[#allocation10 + $0x170] sm:$0xff]  ;;  %v819_v20 = vld [vmem:[#allocation10 + $0x228] sm:$0xff] }
 0x242   :  { %1565 = vmatpush1.bf16.msra.mxu0 %v1564_v41  ;;  %1597 = vmatpush1.bf16.msra.mxu1 %v1596_v42  ;;  %v1618_v41 = vpack.c.bf16 %v773_v35, %v772_v34  ;;  %v1650_v42 = vpack.c.bf16 %v805_v37, %v804_v36  ;;  %v862_v34 = vld [vmem:[#allocation10 + $0x380] sm:$0xff]  ;;  %v863_v36 = vld [vmem:[#allocation10 + $0x388] sm:$0xff] }
 0x243   :  { %1567 = vmatprep.subr.bf16.mxu0 %v1566_v45  ;;  %1599 = vmatprep.subr.bf16.mxu1 %v1598_v46  ;;  %v774_v45 = vld [vmem:[#allocation10 + $0xc0] sm:$0xff]  ;;  %v775_v46 = vld [vmem:[#allocation10 + $0xc8] sm:$0xff]  ;;  %v1702_v37 = vpack.c.bf16 %v863_v36, %v862_v34  ;;  %v853_v36 = vld [vmem:[#allocation10 + $0x338] sm:$0xff] }
 0x246   :  { %1569 = vmatpush1.bf16.msra.mxu0 %v1568_v54  ;;  %1601 = vmatpush1.bf16.msra.mxu1 %v1600_v55  ;;  %v1622_v54 = vpack.c.bf16 %v775_v46, %v774_v45  ;;  %v1654_v55 = vpack.c.bf16 %v807_v49, %v806_v47 }
 0x247   :  { %1571 = vmatprep.subr.bf16.mxu0 %v1570_v58  ;;  %1603 = vmatprep.subr.bf16.mxu1 %v1602_v59  ;;  %v776_v58 = vld [vmem:[#allocation10 + $0xd0] sm:$0xff]  ;;  %v777_v59 = vld [vmem:[#allocation10 + $0xd8] sm:$0xff] }
 0x24a   :  { %1573 = vmatpush1.bf16.msra.mxu0 %v1572_v3  ;;  %1605 = vmatpush1.bf16.msra.mxu1 %v1604_v4  ;;  %v1626_v3 = vpack.c.bf16 %v777_v59, %v776_v58  ;;  %v1658_v4 = vpack.c.bf16 %v809_v61, %v808_v60  ;;  %v847_v58 = vld [vmem:[#allocation10 + $0x308] sm:$0xff]  ;;  %v832_v59 = vld [vmem:[#allocation10 + $0x290] sm:$0xff] }
 0x24b   :  { %1607 = vmatprep.subr.bf16.mxu0 %v1606_v7  ;;  %1639 = vmatprep.subr.bf16.mxu1 %v1638_v8  ;;  %v778_v7 = vld [vmem:[#allocation10 + $0xe0] sm:$0xff]  ;;  %v779_v8 = vld [vmem:[#allocation10 + $0xe8] sm:$0xff]  ;;  %v1704_v5 = vpack.c.bf16 %v847_v58, %v846_v57  ;;  %v824_v57 = vld [vmem:[#allocation10 + $0x250] sm:$0xff] }
 0x24c   :  { %v1630_v14 = vpack.c.bf16 %v779_v8, %v778_v7  ;;  %v817_v7 = vld [vmem:[#allocation10 + $0x218] sm:$0xff] }
 0x24d   :  { %665 = vmatmul.mubr.f32.vlgmr.msra.gmra.mrb[4].mxu0 %v2052_v48  ;;  %736 = vmatmul.mubr.f32.vlgmr.msra.gmra.mrb[4].mxu1 %v2052_v48  ;;  %v1648_v48 = vpack.c.bf16 %v787_v33, %v786_v32  ;;  %v830_v32 = vld [vmem:[#allocation10 + $0x280] sm:$0xff]  ;;  %v831_v33 = vld [vmem:[#allocation10 + $0x288] sm:$0xff]  ;;  %v825_v58 = vld [vmem:[#allocation10 + $0x258] sm:$0xff] }
 0x24e   :  { %1609 = vmatpush3.bf16.msra.mxu0 %v1608_v15  ;;  %1641 = vmatpush3.bf16.msra.mxu1 %v1640_v16  ;;  %v1662_v15 = vpack.c.bf16 %v811_v10, %v810_v9  ;;  %v763_v16 = vld [vmem:[#allocation10 + $0x68] sm:$0xff]  ;;  %v1670_v35 = vpack.c.bf16 %v831_v33, %v830_v32  ;;  %v821_v32 = vld [vmem:[#allocation10 + $0x238] sm:$0xff] }
 0x24f   :  { %1611 = vmatprep.subr.bf16.mxu0 %v1610_v1  ;;  %1643 = vmatprep.subr.bf16.mxu1 %v1642_v19  ;;  %v1632_v1 = vpack.c.bf16 %v763_v16, %v762_v13  ;;  %v1664_v19 = vpack.c.bf16 %v795_v18, %v794_v17  ;;  %v849_v13 = vld [vmem:[#allocation10 + $0x318] sm:$0xff]  ;;  %v866_v16 = vld [vmem:[#allocation10 + $0x3a0] sm:$0xff]  ;;  %v867_v17 = vld [vmem:[#allocation10 + $0x3a8] sm:$0xff]  ;;  %v1676_v18 = vpack.c.bf16 %v817_v7, %v816_v6 }
 0x250   :  { %v826_v7 = vld [vmem:[#allocation10 + $0x260] sm:$0xff] }
 0x252   :  { %1613 = vmatpush3.bf16.msra.mxu0 %v1612_v26  ;;  %1645 = vmatpush3.bf16.msra.mxu1 %v1644_v27  ;;  %v765_v26 = vld [vmem:[#allocation10 + $0x78] sm:$0xff]  ;;  %v1666_v27 = vpack.c.bf16 %v813_v24, %v812_v22  ;;  %v1710_v22 = vpack.c.bf16 %v867_v17, %v866_v16  ;;  %v851_v24 = vld [vmem:[#allocation10 + $0x328] sm:$0xff] }
 0x253   :  { %1615 = vmatprep.subr.bf16.mxu0 %v1614_v30  ;;  %1647 = vmatprep.subr.bf16.mxu1 %v1646_v31  ;;  %v1636_v28 = vpack.c.bf16 %v765_v26, %v764_v25  ;;  %v797_v30 = vld [vmem:[#allocation10 + $0x178] sm:$0xff]  ;;  %v836_v25 = vld [vmem:[#allocation10 + $0x2b0] sm:$0xff] }
 0x254   :  { %v1668_v31 = vpack.c.bf16 %v797_v30, %v796_v29  ;;  %v837_v26 = vld [vmem:[#allocation10 + $0x2b8] sm:$0xff] }
 0x255   :  { %v1682_v33 = vpack.c.bf16 %v837_v26, %v836_v25  ;;  %v845_v17 = vld [vmem:[#allocation10 + $0x2f8] sm:$0xff] }
 0x256   :  { %1617 = vmatpush3.bf16.msra.mxu0 %v1616_v38  ;;  %1649 = vmatpush3.bf16.msra.mxu1 %v1648_v48  ;;  %v418_v38 = vlaneseq  ;;  %v829_v26 = vld [vmem:[#allocation10 + $0x278] sm:$0xff] }
 0x257   :  { %1619 = vmatprep.subr.bf16.mxu0 %v1618_v41  ;;  %1651 = vmatprep.subr.bf16.mxu1 %v1650_v42  ;;  %v2067_v41 = vld [vmem:[%s2104_s6] sm:$0xff] }
 0x258   :  { %v2060_v48 = vshrl.u32 %v418_v38, 7  ;;  %v839_v38 = vld [vmem:[#allocation10 + $0x2c8] sm:$0xff] }
 0x25a   :  { %1621 = vmatpush3.bf16.msra.mxu0 %v1620_v50  ;;  %1653 = vmatpush3.bf16.msra.mxu1 %v1652_v51  ;;  %v420_v39 = vsub.s32 0, %v2060_v48  ;;  %v428_v40 = vsub.s32 2, %v2060_v48  ;;  %v424_v42 = vsub.s32 1, %v2060_v48  ;;  %v432_v43 = vsub.s32 3, %v2060_v48  ;;  %v814_v51 = vld [vmem:[#allocation10 + $0x200] sm:$0xff] }
 0x25b   :  { %1623 = vmatprep.subr.bf16.mxu0 %v1622_v54  ;;  %1655 = vmatprep.subr.bf16.mxu1 %v1654_v55  ;;  %v436_v6 = vsub.s32 4, %v2060_v48  ;;  %v448_v16 = vsub.s32 7, %v2060_v48 }
 0x25c   :  { %v421_v44 = vrot.slane %v2067_v41, %v420_v39  ;;  %v429_v45 = vrot.slane %v2067_v41, %v428_v40  ;;  %v425_v46 = vrot.slane %v2067_v41, %v424_v42  ;;  %v433_v47 = vrot.slane %v2067_v41, %v432_v43  ;;  %v870_v39 = vld [vmem:[#allocation10 + $0x3c0] sm:$0xff]  ;;  %v871_v40 = vld [vmem:[#allocation10 + $0x3c8] sm:$0xff] }
 0x25e   :  { %1625 = vmatpush3.bf16.msra.mxu0 %v1624_v62  ;;  %1657 = vmatpush3.bf16.msra.mxu1 %v1656_v63  ;;  %v833_v62 = vld [vmem:[#allocation10 + $0x298] sm:$0xff]  ;;  %v864_v63 = vld [vmem:[#allocation10 + $0x390] sm:$0xff] }
 0x25f   :  { %1627 = vmatprep.subr.bf16.mxu0 %v1626_v3  ;;  %1659 = vmatprep.subr.bf16.mxu1 %v1658_v4  ;;  %v1672_v4 = vpack.c.bf16 %v815_v52, %v814_v51  ;;  %v1674_v10 = vpack.c.bf16 %v833_v62, %v832_v59  ;;  %v840_v51 = vld [vmem:[#allocation10 + $0x2d0] sm:$0xff]  ;;  %v841_v52 = vld [vmem:[#allocation10 + $0x2d8] sm:$0xff] }
 0x260   :  { %v1690_v59 = vpack.c.bf16 %v841_v52, %v840_v51  ;;  %v857_v62 = vld [vmem:[#allocation10 + $0x358] sm:$0xff] }
 0x262   :  { %1629 = vmatpush3.bf16.msra.mxu0 %v1628_v11  ;;  %1661 = vmatpush3.bf16.msra.mxu1 %v1660_v12  ;;  %v1706_v11 = vpack.c.bf16 %v865_v0, %v864_v63  ;;  %v848_v12 = vld [vmem:[#allocation10 + $0x310] sm:$0xff]  ;;  %v842_v63 = vld [vmem:[#allocation10 + $0x2e0] sm:$0xff]  ;;  %v843_v0 = vld [vmem:[#allocation10 + $0x2e8] sm:$0xff] }
 0x263   :  { %1631 = vmatprep.subr.bf16.mxu0 %v1630_v14  ;;  %1663 = vmatprep.subr.bf16.mxu1 %v1662_v15  ;;  %v834_v14 = vld [vmem:[#allocation10 + $0x2a0] sm:$0xff]  ;;  %v835_v15 = vld [vmem:[#allocation10 + $0x2a8] sm:$0xff] }
 0x264   :  { %v1678_v21 = vpack.c.bf16 %v835_v15, %v834_v14  ;;  %v844_v14 = vld [vmem:[#allocation10 + $0x2f0] sm:$0xff]  ;;  %v440_v15 = vsub.s32 5, %v2060_v48 }
 0x266   :  { %1633 = vmatpush3.bf16.msra.mxu0 %v1632_v1  ;;  %1665 = vmatpush3.bf16.msra.mxu1 %v1664_v19  ;;  %v1708_v1 = vpack.c.bf16 %v849_v13, %v848_v12  ;;  %v818_v19 = vld [vmem:[#allocation10 + $0x220] sm:$0xff]  ;;  %v859_v13 = vld [vmem:[#allocation10 + $0x368] sm:$0xff] }
 0x267   :  { %1635 = vmatprep.subr.bf16.mxu0 %v1634_v23  ;;  %1667 = vmatprep.subr.bf16.mxu1 %v1666_v27  ;;  %v850_v23 = vld [vmem:[#allocation10 + $0x320] sm:$0xff]  ;;  %v868_v27 = vld [vmem:[#allocation10 + $0x3b0] sm:$0xff]  ;;  %v1680_v29 = vpack.c.bf16 %v819_v20, %v818_v19  ;;  %v437_v19 = vrot.slane %v2067_v41, %v436_v6 }
 0x268   :  { %v1712_v30 = vpack.c.bf16 %v851_v24, %v850_v23  ;;  %v858_v12 = vld [vmem:[#allocation10 + $0x360] sm:$0xff]  ;;  %v1698_v24 = vpack.c.bf16 %v845_v17, %v844_v14 }
 0x26a   :  { %1637 = vmatpush3.bf16.msra.mxu0 %v1636_v28  ;;  %1669 = vmatpush3.bf16.msra.mxu1 %v1668_v31  ;;  %v869_v28 = vld [vmem:[#allocation10 + $0x3b8] sm:$0xff]  ;;  %v820_v31 = vld [vmem:[#allocation10 + $0x230] sm:$0xff] }
 0x26b   :  { %1671 = vmatprep.subr.bf16.mxu0 %v1670_v35  ;;  %1703 = vmatprep.subr.bf16.mxu1 %v1702_v37  ;;  %v1714_v34 = vpack.c.bf16 %v869_v28, %v868_v27  ;;  %v852_v35 = vld [vmem:[#allocation10 + $0x330] sm:$0xff]  ;;  %v838_v37 = vld [vmem:[#allocation10 + $0x2c0] sm:$0xff]  ;;  %v1684_v42 = vpack.c.bf16 %v821_v32, %v820_v31  ;;  %v861_v28 = vld [vmem:[#allocation10 + $0x378] sm:$0xff] }
 0x26c   :  { %v1716_v43 = vpack.c.bf16 %v853_v36, %v852_v35  ;;  %v860_v27 = vld [vmem:[#allocation10 + $0x370] sm:$0xff] }
 0x300   :  { %v524_v49 = vpop.f32.mrb[2].mxu0  ;;  %v595_v50 = vpop.f32.mrb[2].mxu1 }
 0x301   :  { %v525_v53 = vadd.f32 %v524_v49, %v421_v44  ;;  %v596_v54 = vadd.f32 %v595_v50, %v429_v45  ;;  %v526_v55 = vpop.f32.mrb[3].mxu0  ;;  %v597_v56 = vpop.f32.mrb[3].mxu1  ;;  %v822_v44 = vld [vmem:[#allocation10 + $0x240] sm:$0xff]  ;;  %v823_v45 = vld [vmem:[#allocation10 + $0x248] sm:$0xff] }
 0x302   :  { %v527_v60 = vadd.f32 %v526_v55, %v425_v46  ;;  %v598_v61 = vadd.f32 %v597_v56, %v433_v47  ;;  %v1686_v46 = vpack.c.bf16 %v839_v38, %v838_v37  ;;  %v1718_v47 = vpack.c.bf16 %v871_v40, %v870_v39  ;;  %v854_v49 = vld [vmem:[#allocation10 + $0x340] sm:$0xff]  ;;  %v855_v50 = vld [vmem:[#allocation10 + $0x348] sm:$0xff] }
 0x303   :  { %v742_v8 = vmax.f32 %v525_v53, 0.0  ;;  %v744_v9 = vmax.f32 %v596_v54, 0.0  ;;  %v872_v53 = vld [vmem:[#allocation10 + $0x3d0] sm:$0xff]  ;;  %v873_v54 = vld [vmem:[#allocation10 + $0x3d8] sm:$0xff]  ;;  %v1688_v55 = vpack.c.bf16 %v823_v45, %v822_v44  ;;  %v1720_v56 = vpack.c.bf16 %v855_v50, %v854_v49 }
 0x304   :  { %v743_v2 = vmax.f32 %v527_v60, 0.0  ;;  %v745_v3 = vmax.f32 %v598_v61, 0.0  ;;  %v1722_v60 = vpack.c.bf16 %v873_v54, %v872_v53  ;;  %v856_v61 = vld [vmem:[#allocation10 + $0x350] sm:$0xff] }
 0x306   :  { %949 = vmatprep.mubr.f32.mxu0 %v743_v2  ;;  %1019 = vmatprep.mubr.f32.mxu1 %v745_v3  ;;  %v874_v2 = vld [vmem:[#allocation10 + $0x3e0] sm:$0xff]  ;;  %v875_v3 = vld [vmem:[#allocation10 + $0x3e8] sm:$0xff] }
 0x307   :  { %950 = vmatmul.mubr.f32.vlgmr.msra.gmra.mrb[6].mxu0 %v742_v8  ;;  %1020 = vmatmul.mubr.f32.vlgmr.msra.gmra.mrb[6].mxu1 %v744_v9  ;;  %v827_v8 = vld [vmem:[#allocation10 + $0x268] sm:$0xff]  ;;  %v1694_v9 = vpack.c.bf16 %v843_v0, %v842_v63 }
 0x308   :  { %1673 = vmatpush3.bf16.msra.mxu0 %v1672_v4  ;;  %1705 = vmatpush3.bf16.msra.mxu1 %v1704_v5  ;;  %v1692_v4 = vpack.c.bf16 %v825_v58, %v824_v57  ;;  %v1724_v5 = vpack.c.bf16 %v857_v62, %v856_v61  ;;  %v1696_v20 = vpack.c.bf16 %v827_v8, %v826_v7 }
 0x309   :  { %1675 = vmatprep.subr.bf16.mxu0 %v1674_v10  ;;  %1707 = vmatprep.subr.bf16.mxu1 %v1706_v11  ;;  %v1726_v10 = vpack.c.bf16 %v875_v3, %v874_v2  ;;  %v444_v11 = vsub.s32 6, %v2060_v48  ;;  %v441_v48 = vrot.slane %v2067_v41, %v440_v15 }
 0x30b   :  { %v445_v23 = vrot.slane %v2067_v41, %v444_v11 }
 0x30c   :  { %1677 = vmatpush3.bf16.msra.mxu0 %v1676_v18  ;;  %1709 = vmatpush3.bf16.msra.mxu1 %v1708_v1  ;;  %v876_v18 = vld [vmem:[#allocation10 + $0x3f0] sm:$0xff]  ;;  %v877_v1 = vld [vmem:[#allocation10 + $0x3f8] sm:$0xff] }
 0x30d   :  { %1679 = vmatprep.subr.bf16.mxu0 %v1678_v21  ;;  %1711 = vmatprep.subr.bf16.mxu1 %v1710_v22  ;;  %v1728_v21 = vpack.c.bf16 %v859_v13, %v858_v12  ;;  %v828_v22 = vld [vmem:[#allocation10 + $0x270] sm:$0xff]  ;;  %v1730_v25 = vpack.c.bf16 %v877_v1, %v876_v18 }
 0x30e   :  { %v1700_v32 = vpack.c.bf16 %v829_v26, %v828_v22 }
 0x310   :  { %1681 = vmatpush3.bf16.msra.mxu0 %v1680_v29  ;;  %1713 = vmatpush3.bf16.msra.mxu1 %v1712_v30  ;;  %v449_v29 = vrot.slane %v2067_v41, %v448_v16 }
 0x311   :  { %1683 = vmatprep.subr.bf16.mxu0 %v1682_v33  ;;  %1715 = vmatprep.subr.bf16.mxu1 %v1714_v34  ;;  %v1732_v33 = vpack.c.bf16 %v861_v28, %v860_v27 }
 0x314   :  { %1685 = vmatpush3.bf16.msra.mxu0 %v1684_v42  ;;  %1717 = vmatpush3.bf16.msra.mxu1 %v1716_v43 }
 0x315   :  { %1687 = vmatprep.subr.bf16.mxu0 %v1686_v46  ;;  %1719 = vmatprep.subr.bf16.mxu1 %v1718_v47  ;;  %v1185_v46 = vld [vmem:[%s2106_s8] ss:$0 sm:$0xff] }
 0x318   :  { %1689 = vmatpush3.bf16.msra.mxu0 %v1688_v55  ;;  %1721 = vmatpush3.bf16.msra.mxu1 %v1720_v56 }
 0x319   :  { %1691 = vmatprep.subr.bf16.mxu0 %v1690_v59  ;;  %1723 = vmatprep.subr.bf16.mxu1 %v1722_v60 }
 0x31c   :  { %1693 = vmatpush3.bf16.msra.mxu0 %v1692_v4  ;;  %1725 = vmatpush3.bf16.msra.mxu1 %v1724_v5 }
 0x31d   :  { %1695 = vmatprep.subr.bf16.mxu0 %v1694_v9  ;;  %1727 = vmatprep.subr.bf16.mxu1 %v1726_v10 }
 0x320   :  { %v666_v30 = vpop.f32.mrb[4].mxu0  ;;  %v737_v31 = vpop.f32.mrb[4].mxu1  ;;  %1697 = vmatpush3.bf16.msra.mxu0 %v1696_v20  ;;  %1729 = vmatpush3.bf16.msra.mxu1 %v1728_v21 }
 0x321   :  { %v667_v34 = vadd.f32 %v666_v30, %v437_v19  ;;  %v738_v35 = vadd.f32 %v737_v31, %v445_v23  ;;  %v668_v36 = vpop.f32.mrb[5].mxu0  ;;  %v739_v37 = vpop.f32.mrb[5].mxu1  ;;  %1699 = vmatprep.subr.bf16.mxu0 %v1698_v24  ;;  %1731 = vmatprep.subr.bf16.mxu1 %v1730_v25 }
 0x322   :  { %v669_v38 = vadd.f32 %v668_v36, %v441_v48  ;;  %v740_v39 = vadd.f32 %v739_v37, %v449_v29 }
 0x323   :  { %v746_v43 = vmax.f32 %v667_v34, 0.0  ;;  %v748_v41 = vmax.f32 %v738_v35, 0.0 }
 0x324   :  { %v747_v40 = vmax.f32 %v669_v38, 0.0  ;;  %v749_v42 = vmax.f32 %v740_v39, 0.0  ;;  %1701 = vmatpush3.bf16.msra.mxu0 %v1700_v32  ;;  %1733 = vmatpush3.bf16.msra.mxu1 %v1732_v33 }
 0x326   :  { %1089 = vmatprep.mubr.f32.mxu0 %v747_v40  ;;  %1159 = vmatprep.mubr.f32.mxu1 %v749_v42 }
 0x327   :  { %1090 = vmatmul.mubr.f32.vlgmr.msra.gmra.mrb[8].mxu0 %v746_v43  ;;  %1160 = vmatmul.mubr.f32.vlgmr.msra.gmra.mrb[8].mxu1 %v748_v41 }
 0x3da   :  { %v1252_v44 = vpop.f32.mrb[6].mxu0  ;;  %v1287_v45 = vpop.f32.mrb[6].mxu1 }
 0x3db   :  { %v1253_v47 = vpop.f32.mrb[7].mxu0  ;;  %v1288_v49 = vpop.f32.mrb[7].mxu1 }
 0x3dc   :  { %v1254_v50 = vadd.f32 %v1253_v47, %v1252_v44  ;;  %v1289_v51 = vadd.f32 %v1288_v49, %v1287_v45 }
 0x3de   :  { %v952_v52 = vadd.f32 %v1254_v50, %v1185_v46 }
 0x3e0   :  { %v1022_v53 = vadd.f32 %v1289_v51, %v952_v52 }
 0x3fa   :  { %v1322_v54 = vpop.f32.mrb[8].mxu0  ;;  %v1357_v55 = vpop.f32.mrb[8].mxu1 }
 0x3fb   :  { %v1323_v56 = vpop.f32.mrb[9].mxu0  ;;  %v1358_v57 = vpop.f32.mrb[9].mxu1 }
 0x3fc   :  { %v1324_v58 = vadd.f32 %v1323_v56, %v1322_v54  ;;  %v1359_v59 = vadd.f32 %v1358_v57, %v1357_v55 }
 0x3fe   :  { %v1092_v60 = vadd.f32 %v1324_v58, %v1022_v53 }
 0x400   :  { %v1162_v61 = vadd.f32 %v1359_v59, %v1092_v60 }
 0x402   :  { %1165 = vst [vmem:[#allocation11] sm:$0xff] %v1162_v61 }
 0x403   :  { %1868 = shalt.err (!%p1865_p2)
}
 0x404   :  { %s1869_s13 = scalar_lea.hbm %s2107_s9, 128 }
 0x405   :  { %p1870_p3 = scmp.ne.s32.totalorder %s2107_s9, %s1869_s13  ;;  %p1873_p4 = scmp.lt.u32.totalorder %s1869_s13, %s2107_s9 }
 0x407   :  { %p1875_p5 = pnand %p1873_p4, %p1870_p3 }
 0x409   :  { %1878 = shalt.err (!%p1875_p5)
}
 0x40a   :  { %1175 = dma.vmem_to_hbm [thread:$0]  %s1173_s12, 128, %s2107_s9, [#allocation4]  }
 0x40b   :  { %1885 = dma.done.wait [#allocation4], 128  }
 0x40c   :  { %1886 = vsyncadd [#allocation4], 4294967168 }
 0x40d   :  { %1179 = vsyncpa [#allocation3], 1 }
 0x40e   :  { %1180 = vsyncpa [#allocation6], 1 }
 0x40f   :  { %1181 = vsyncpa [#allocation9], 1 }
 0x410   :  { %1182 = vsyncpa [#allocation4], 1 }

</bundles_post_ra>
